<compile_context>
chip_gen: v7x
topology: tpu7x:2x2x1
jax: 0.10.0
libtpu: 0.0.40
codegen_flags: <defaults>
</compile_context>

<pallas_src>
import numpy as np
import jax
import jax.numpy as jnp
from jax.experimental import pallas as pl
from jax.experimental.pallas import tpu as pltpu

N_TIME = 200
INPUT_FREQ = 5
N_BINS = 10
LANE = 128            # TPU lane width
T_PAD = 256           # n_time   200 -> 256  (multiple of 128)
P_PAD = 128           # n_pixels  64 -> 128  (multiple of 128)


def _round_up(x, m):
    return (x + m - 1) // m * m


# --------------------------------------------------------------------------- #
# Pallas kernel: two lane-aligned MXU matmuls + f32 smooth-abs (EUP sqrt)
# --------------------------------------------------------------------------- #
def scattering_kernel(x_ref, m_ref, w2_ref, b_ref, out_ref):
    # real(ifft(...)) / correction, fully folded:  [TB, P_PAD] @ [P_PAD, T_PAD]
    real = jnp.dot(x_ref[...], m_ref[...], preferred_element_type=jnp.float32)
    # smooth abs in f32 (eps = 1e-20 would underflow in bf16)
    absr = jnp.sqrt(real * real + 1e-20)
    # chunk sums + nn.Linear folded into one lane-dense matrix: [T_PAD, 128]
    out_ref[...] = (jnp.dot(absr.astype(w2_ref.dtype), w2_ref[...],
                            preferred_element_type=jnp.float32) + b_ref[...])


# --------------------------------------------------------------------------- #
# Host-side algebraic folding (float64) + lane/sublane zero padding
# --------------------------------------------------------------------------- #
def fold_params(v, s_re, s_im, waveform, correction, lin_w, lin_b,
                n_pixels, dtype=jnp.bfloat16):
    T = N_TIME
    v = np.asarray(v, np.float64)                 # [P]
    s_re = np.asarray(s_re, np.float64)           # [T, P]
    s_im = np.asarray(s_im, np.float64)           # [T, P]
    corr = np.asarray(correction, np.float64)     # [T]
    lin_w = np.asarray(lin_w, np.float64)         # [10, 10]
    lin_b = np.asarray(lin_b, np.float32)         # [10]

    # FFT of the constant waveform (rank-1 factorization of fft(E_scaled, dim=1))
    wfft = np.fft.fft(np.asarray(waveform, np.complex128))
    wfre, wfim = wfft.real, wfft.imag

    # real inverse-DFT matrices:
    #   real(ifft(s))[t] = sum_i Re(s_i)*cc[i,t] + Im(s_i)*cs[i,t]
    idx = np.arange(T)
    theta = 2.0 * np.pi * (np.outer(idx, idx) % T) / T
    cc = np.cos(theta) / T
    cs = -np.sin(theta) / T

    # fold the wfft complex mix AND 1/correction into the iDFT matrices
    C1 = (wfre[:, None] * cc + wfim[:, None] * cs) / corr[None, :]
    C2 = (wfre[:, None] * cs - wfim[:, None] * cc) / corr[None, :]
    # fold v and the complex scatter matrix:  real = x @ M
    M = v[:, None] * (s_re.T @ C1 + s_im.T @ C2)                 # [P, T]

    # fold the 10-way chunk selector and the Linear weight:  out = |real| @ W2 + b
    chunk = T // N_BINS
    chunk_sel = np.zeros((T, N_BINS))
    for c in range(N_BINS):
        chunk_sel[c * chunk:(c + 1) * chunk, c] = 1.0
    W2 = chunk_sel @ lin_w.T                                     # [T, 10]

    # zero-pad to MXU / lane-aligned shapes (padding stays in the wrapper)
    M_pad = np.zeros((P_PAD, T_PAD), np.float32)
    M_pad[:n_pixels, :T] = M
    W2_pad = np.zeros((T_PAD, LANE), np.float32)
    W2_pad[:T, :N_BINS] = W2
    b_pad = np.zeros((1, LANE), np.float32)
    b_pad[0, :N_BINS] = lin_b

    return dict(M=jnp.asarray(M_pad, dtype),
                W2=jnp.asarray(W2_pad, dtype),
                b=jnp.asarray(b_pad, jnp.float32))


# --------------------------------------------------------------------------- #
# Wrapper: batch tiling, lane-dense output, parallel grid
# --------------------------------------------------------------------------- #
def scattering_classifier_forward(x_batch, folded):
    B, P = x_batch.shape
    # batch tile: multiple of 16 (bf16 sublane packing), capped at 1024 to bound
    # the [TB, T_PAD] f32 intermediate (1 MiB) — constants are < 0.2 MiB bf16.
    TB = min(1024, _round_up(max(B, 16), 16))
    B_pad = _round_up(B, TB)

    x_pad = jnp.zeros((B_pad, P_PAD), jnp.bfloat16)
    x_pad = x_pad.at[:B, :P].set(x_batch.astype(jnp.bfloat16))

    out = pl.pallas_call(
        scattering_kernel,
        out_shape=jax.ShapeDtypeStruct((B_pad, LANE), jnp.float32),
        grid=(B_pad // TB,),
        in_specs=[
            pl.BlockSpec((TB, P_PAD), lambda i: (i, 0)),        # streamed x tile
            pl.BlockSpec((P_PAD, T_PAD), lambda i: (0, 0)),     # constants stay
            pl.BlockSpec((T_PAD, LANE), lambda i: (0, 0)),      #   VMEM-resident
            pl.BlockSpec((1, LANE), lambda i: (0, 0)),
        ],
        out_specs=pl.BlockSpec((TB, LANE), lambda i: (i, 0)),   # lane-dense store
        compiler_params=pltpu.CompilerParams(
            dimension_semantics=("parallel",)),                 # megacore on v7x
    )(x_pad, folded["M"], folded["W2"], folded["b"])
    return out[:B, :N_BINS]


# --------------------------------------------------------------------------- #
# Vectorized pure-JAX complex reference (exactly mirrors the PyTorch forward)
# --------------------------------------------------------------------------- #
def ref_forward(xb, v, s_re, s_im, waveform, correction, lin_w, lin_b):
    S = jnp.asarray(s_re) + 1j * jnp.asarray(s_im)               # [T, P]
    wfft = jnp.fft.fft(jnp.asarray(waveform, jnp.complex64))     # [T]
    u = xb * v[None, :]                                          # [B, P]
    # s[b,i] = wfft[i] * sum_p S[i,p] * u[b,p]
    s = (u.astype(jnp.complex64) @ S.T) * wfft[None, :]          # [B, T]
    real = jnp.fft.ifft(s, axis=1).real / correction[None, :]
    chunk = N_TIME // N_BINS
    chunks = real.reshape(xb.shape[0], N_BINS, chunk)
    bins = jnp.sum(jnp.sqrt(chunks ** 2 + 1e-20), axis=2)
    return bins @ jnp.asarray(lin_w).T + lin_b


# --------------------------------------------------------------------------- #
if __name__ == "__main__":
    h = w = 8
    n_pixels = h * w
    B = 2

    # ---- constant time-domain waveform (as in the reference script) ----
    t = np.linspace(-3, 3, N_TIME)
    waveform = (np.exp(1j * INPUT_FREQ * t)
                * np.exp(-500 * INPUT_FREQ ** 2 * t ** 2)).astype(np.complex64)

    # ---- deterministic parameter init ----
    key = jax.random.PRNGKey(0)
    k1, k2, k3, k4, k5, k6, k7 = jax.random.split(key, 7)
    v = jax.random.uniform(k1, (n_pixels,), jnp.float32)              # nn.Parameter(torch.rand)
    s_re = jax.random.normal(k2, (N_TIME, n_pixels), jnp.float32)     # scatter matrix (complex)
    s_im = jax.random.normal(k3, (N_TIME, n_pixels), jnp.float32)
    # TODO(synk): the real `correction` comes from a 10000-iteration Monte-Carlo
    # calibration (with matplotlib plotting) in __init__; here it is a
    # deterministic strictly-positive vector (folding 1/correction is exact).
    correction = 0.1 + 0.9 * jax.random.uniform(k4, (N_TIME,), jnp.float32)
    lin_w = 0.3 * jax.random.normal(k5, (N_BINS, N_BINS), jnp.float32)
    lin_b = 0.1 * jax.random.normal(k6, (N_BINS,), jnp.float32)
    x_batch = jax.random.uniform(k7, (B, n_pixels), jnp.float32)

    # ---- host-side folding (exact for inference; redo after any param update) ----
    folded = fold_params(v, s_re, s_im, waveform, correction, lin_w, lin_b,
                         n_pixels, dtype=jnp.bfloat16)

    # ---- run the Pallas kernel (small batch, as in the module spec) ----
    out = scattering_classifier_forward(x_batch, folded)
    out = jax.block_until_ready(out)

    ref = jax.block_until_ready(
        ref_forward(x_batch, v, s_re, s_im, waveform, correction, lin_w, lin_b))
    scale = float(jnp.max(jnp.abs(ref)))
    np.testing.assert_allclose(np.asarray(out), np.asarray(ref),
                               rtol=5e-2, atol=2e-2 * scale)

    # ---- secondary check: larger, non-multiple-of-16 batch exercises padding ----
    xb2 = jax.random.uniform(jax.random.PRNGKey(1), (307, n_pixels), jnp.float32)
    out2 = jax.block_until_ready(scattering_classifier_forward(xb2, folded))
    ref2 = jax.block_until_ready(
        ref_forward(xb2, v, s_re, s_im, waveform, correction, lin_w, lin_b))
    scale2 = float(jnp.max(jnp.abs(ref2)))
    np.testing.assert_allclose(np.asarray(out2), np.asarray(ref2),
                               rtol=5e-2, atol=2e-2 * scale2)

    print("KERNEL_OK")
</pallas_src>

<mosaic_0001>
module attributes {stable_mosaic.version = 11 : i64} {
  func.func @scattering_kernel(%arg0: i32, %arg1: memref<16x128xbf16, #tpu.memory_space<vmem>>, %arg2: memref<128x256xbf16, #tpu.memory_space<vmem>>, %arg3: memref<256x128xbf16, #tpu.memory_space<vmem>>, %arg4: memref<1x128xf32, #tpu.memory_space<vmem>>, %arg5: memref<16x128xf32, #tpu.memory_space<vmem>>) attributes {dimension_semantics = [#tpu.dimension_semantics<parallel>], iteration_bounds = array<i64: 1>, scalar_prefetch = 0 : i64, scratch_operands = 0 : i64, tpu.core_type = #tpu.core_type<tc>, window_params = [{transform_indices = @transform_0, window_bounds = array<i64: 16, 128>}, {pipeline_mode = #tpu.pipeline_mode<synchronous>, transform_indices = @transform_1, window_bounds = array<i64: 128, 256>}, {pipeline_mode = #tpu.pipeline_mode<synchronous>, transform_indices = @transform_2, window_bounds = array<i64: 256, 128>}, {pipeline_mode = #tpu.pipeline_mode<synchronous>, transform_indices = @transform_3, window_bounds = array<i64: 1, 128>}, {transform_indices = @transform_4, window_bounds = array<i64: 16, 128>}]} {
    %c0 = arith.constant 0 : index
    %c0_0 = arith.constant 0 : index
    %0 = vector.load %arg1[%c0, %c0_0] : memref<16x128xbf16, #tpu.memory_space<vmem>>, vector<16x128xbf16>
    %c0_1 = arith.constant 0 : index
    %c0_2 = arith.constant 0 : index
    %1 = vector.load %arg2[%c0_1, %c0_2] : memref<128x256xbf16, #tpu.memory_space<vmem>>, vector<128x256xbf16>
    %cst = arith.constant dense<0.000000e+00> : vector<16x256xf32>
    %2 = tpu.matmul %0, %1, %cst {dimension_numbers = #tpu.dot_dimension_numbers<[1], [0], [0], [1], [0, 0, 1, 1], [], []>} : vector<16x128xbf16>, vector<128x256xbf16>, vector<16x256xf32> -> vector<16x256xf32>
    %3 = arith.mulf %2, %2 : vector<16x256xf32>
    %cst_3 = arith.constant 9.99999968E-21 : f32
    %4 = vector.broadcast %cst_3 : f32 to vector<16x256xf32>
    %5 = arith.addf %3, %4 : vector<16x256xf32>
    %6 = math.sqrt %5 : vector<16x256xf32>
    %7 = arith.truncf %6 : vector<16x256xf32> to vector<16x256xbf16>
    %c0_4 = arith.constant 0 : index
    %c0_5 = arith.constant 0 : index
    %8 = vector.load %arg3[%c0_4, %c0_5] : memref<256x128xbf16, #tpu.memory_space<vmem>>, vector<256x128xbf16>
    %cst_6 = arith.constant dense<0.000000e+00> : vector<16x128xf32>
    %9 = tpu.matmul %7, %8, %cst_6 {dimension_numbers = #tpu.dot_dimension_numbers<[1], [0], [0], [1], [0, 0, 1, 1], [], []>} : vector<16x256xbf16>, vector<256x128xbf16>, vector<16x128xf32> -> vector<16x128xf32>
    %c0_7 = arith.constant 0 : index
    %c0_8 = arith.constant 0 : index
    %10 = vector.load %arg4[%c0_7, %c0_8] : memref<1x128xf32, #tpu.memory_space<vmem>>, vector<1x128xf32>
    %11 = vector.broadcast %10 : vector<1x128xf32> to vector<16x128xf32>
    %12 = arith.addf %9, %11 : vector<16x128xf32>
    %c0_9 = arith.constant 0 : index
    %c0_10 = arith.constant 0 : index
    %13 = vector.load %arg5[%c0_9, %c0_10] : memref<16x128xf32, #tpu.memory_space<vmem>>, vector<16x128xf32>
    tpu.vector_store %arg5[%c0_9, %c0_10], %12 {strides = array<i32>} : memref<16x128xf32, #tpu.memory_space<vmem>>, vector<16x128xf32>,
    return
  }
  func.func @transform_0(%arg0: i32) -> (i32, i32) {
    %c0_i32 = arith.constant 0 : i32
    %c0_i32_0 = arith.constant 0 : i32
    return %arg0, %c0_i32 : i32, i32
  }
  func.func @transform_1(%arg0: i32) -> (i32, i32) {
    %c0_i32 = arith.constant 0 : i32
    %c0_i32_0 = arith.constant 0 : i32
    %c0_i32_1 = arith.constant 0 : i32
    return %c0_i32, %c0_i32_0 : i32, i32
  }
  func.func @transform_2(%arg0: i32) -> (i32, i32) {
    %c0_i32 = arith.constant 0 : i32
    %c0_i32_0 = arith.constant 0 : i32
    %c0_i32_1 = arith.constant 0 : i32
    return %c0_i32, %c0_i32_0 : i32, i32
  }
  func.func @transform_3(%arg0: i32) -> (i32, i32) {
    %c0_i32 = arith.constant 0 : i32
    %c0_i32_0 = arith.constant 0 : i32
    %c0_i32_1 = arith.constant 0 : i32
    return %c0_i32, %c0_i32_0 : i32, i32
  }
  func.func @transform_4(%arg0: i32) -> (i32, i32) {
    %c0_i32 = arith.constant 0 : i32
    %c0_i32_0 = arith.constant 0 : i32
    return %arg0, %c0_i32 : i32, i32
  }
}

</mosaic_0001>

<bundles_post_ra>
// kernel: tpu_custom_call.1
= control target key start
LH: loop header
LB: loop body
LE: loop exit
PB: predicated region body
PF: predicated region fallthrough
CT: control target
= control target key end

     0   :  { %9 = vsyncpa [#allocation3], 0  ;;  %s742_s0 = inlined_call_operand.hbm [shape: bf16[16,128], index: 0, kind: input, shape index: {}]   ;;  %s743_s1 = inlined_call_operand.hbm [shape: bf16[128,256], index: 1, kind: input, shape index: {}]   ;;  %s744_s2 = inlined_call_operand.hbm [shape: bf16[256,128], index: 2, kind: input, shape index: {}]   ;;  %s745_s3 = inlined_call_operand.vmem [shape: f32[1,128], index: 3, kind: input, shape index: {}]   ;;  %s746_s4 = inlined_call_operand.hbm [shape: f32[16,128], index: 4, kind: output, shape index: {}]  }
   0x1   :  { %10 = vsyncpa [#allocation6], 0 }
   0x2   :  { %11 = vsyncpa [#allocation4], 0  ;;  %s649_s15 = smov [#allocation5]   ;;  %s555_s19 = scalar_lea.hbm %s743_s1, 2048 }
   0x3   :  { %s29_s16 = sshll.u32 %s649_s15, 4  ;;  %p556_p0 = scmp.ne.s32.totalorder %s743_s1, %s555_s19  ;;  %s30_s16 = int_to_ptr.vmem [resolvable:$true] %s29_s16 }
   0x4   :  { %p559_p1 = scmp.lt.u32.totalorder %s555_s19, %s743_s1 }
   0x6   :  { %p561_p2 = pnand %p559_p1, %p556_p0 }
   0x8   :  { %564 = shalt.err (!%p561_p2)
}
   0x9   :  { %s565_s24 = scalar_lea.vmem %s30_s16, 2048  ;;  %p570_p4 = scmp.lt.s32.totalorder %s30_s16, %s30_s16 }
   0xa   :  { %p566_p3 = scmp.ne.s32.totalorder %s30_s16, %s565_s24  ;;  %p571_p5 = scmp.lt.s32.totalorder %s565_s24, %s565_s24 }
   0xc   :  { %p572_p6 = por %p571_p5, %p570_p4 }
   0xe   :  { %p573_p7 = pnand %p572_p6, %p566_p3 }
  0x10   :  { %576 = shalt.err (!%p573_p7)
}
  0x11   :  { %s650_s25 = smov 128   ;;  %s651_s26 = smov 8  }
  0x12   :  { %35 = dma.hbm_to_vmem [thread:$0]  %s743_s1, 2048, %s30_s16, [#allocation6], %s650_s25, %s650_s25, %s651_s26  }
  0x13   :  { %s652_s29 = smov [#allocation2]   ;;  %s577_s7 = scalar_lea.hbm %s742_s0, 128 }
  0x14   :  { %s17_s30 = sshll.u32 %s652_s29, 4  ;;  %p578_p8 = scmp.ne.s32.totalorder %s742_s0, %s577_s7  ;;  %s18_s30 = int_to_ptr.vmem [resolvable:$true] %s17_s30 }
  0x15   :  { %p581_p9 = scmp.lt.u32.totalorder %s577_s7, %s742_s0 }
  0x17   :  { %p583_p10 = pnand %p581_p9, %p578_p8 }
  0x19   :  { %586 = shalt.err (!%p583_p10)
}
  0x1a   :  { %s587_s12 = scalar_lea.vmem %s18_s30, 128  ;;  %p592_p12 = scmp.lt.s32.totalorder %s18_s30, %s18_s30 }
  0x1b   :  { %p588_p11 = scmp.ne.s32.totalorder %s18_s30, %s587_s12  ;;  %p593_p13 = scmp.lt.s32.totalorder %s587_s12, %s587_s12 }
  0x1d   :  { %p594_p0 = por %p593_p13, %p592_p12 }
  0x1f   :  { %p595_p1 = pnand %p594_p0, %p588_p11 }
  0x21   :  { %598 = shalt.err (!%p595_p1)
}
  0x22   :  { %s653_s1 = smov 64   ;;  %s654_s13 = smov 4  }
  0x23   :  { %23 = dma.hbm_to_vmem [thread:$0]  %s742_s0, 128, %s18_s30, [#allocation3], %s653_s1, %s653_s1, %s654_s13  }
  0x24   :  { %s655_s16 = smov [#allocation7]   ;;  %s599_s20 = scalar_lea.hbm %s744_s2, 2048 }
  0x25   :  { %s41_s17 = sshll.u32 %s655_s16, 4  ;;  %p600_p2 = scmp.ne.s32.totalorder %s744_s2, %s599_s20  ;;  %s42_s17 = int_to_ptr.vmem [resolvable:$true] %s41_s17 }
  0x26   :  { %p603_p3 = scmp.lt.u32.totalorder %s599_s20, %s744_s2 }
  0x28   :  { %p605_p4 = pnand %p603_p3, %p600_p2 }
  0x2a   :  { %608 = shalt.err (!%p605_p4)
}
  0x2b   :  { %s609_s27 = scalar_lea.vmem %s42_s17, 2048  ;;  %p614_p6 = scmp.lt.s32.totalorder %s42_s17, %s42_s17 }
  0x2c   :  { %p610_p5 = scmp.ne.s32.totalorder %s42_s17, %s609_s27  ;;  %p615_p7 = scmp.lt.s32.totalorder %s609_s27, %s609_s27 }
  0x2e   :  { %p616_p8 = por %p615_p7, %p614_p6 }
  0x30   :  { %p617_p9 = pnand %p616_p8, %p610_p5 }
  0x32   :  { %620 = shalt.err (!%p617_p9)
}
  0x33   :  { %47 = dma.hbm_to_vmem [thread:$0]  %s744_s2, 2048, %s42_s17, [#allocation6], %s653_s1, %s653_s1, %s654_s13  }
  0x34   :  { %643 = dma.done.wait [#allocation3], 128  }
  0x35   :  { %644 = vsyncadd [#allocation3], 4294967168 }
  0x36   :  { %645 = dma.done.wait [#allocation6], 4096  }
  0x37   :  { %646 = vsyncadd [#allocation6], 4294963200  ;;  %v656_v0 = vmov 0   ;;  %v506_v1 = vld [vmem:[#allocation5 + $0x4] ss:$8 sps:$4 sm:$0xff]   ;;  %v530_v21 = vld [vmem:[#allocation2] sm:$0xff]  }
  0x38   :  { %196 = vmatprep.mubr.bf16.mxu0 %v656_v0  ;;  %v508_v2 = vld [vmem:[#allocation5] ss:$8 sps:$4 sm:$0xff]   ;;  %164 = vmatprep.subr.bf16.mxu0 %v506_v1  ;;  %v509_v3 = vld [vmem:[#allocation5 + $0x14] ss:$8 sps:$4 sm:$0xff]   ;;  %v511_v4 = vld [vmem:[#allocation5 + $0x10] ss:$8 sps:$4 sm:$0xff]  }
  0x39   :  { %165 = vmatpush1.bf16.msra.mxu0 %v508_v2  ;;  %v512_v5 = vld [vmem:[#allocation5 + $0x24] ss:$8 sps:$4 sm:$0xff]   ;;  %v514_v6 = vld [vmem:[#allocation5 + $0x20] ss:$8 sps:$4 sm:$0xff]   ;;  %v515_v7 = vld [vmem:[#allocation5 + $0x34] ss:$8 sps:$4 sm:$0xff]  }
  0x3a   :  { %166 = vmatprep.subr.bf16.mxu0 %v509_v3  ;;  %v517_v8 = vld [vmem:[#allocation5 + $0x30] ss:$8 sps:$4 sm:$0xff]   ;;  %v518_v9 = vld [vmem:[#allocation5 + $0x44] ss:$8 sps:$4 sm:$0xff]   ;;  %v520_v11 = vld [vmem:[#allocation5 + $0x40] ss:$8 sps:$4 sm:$0xff]  }
  0x3b   :  { %v531_v10 = vld [vmem:[#allocation7 + $0x40] sm:$0xff]   ;;  %v521_v13 = vld [vmem:[#allocation5 + $0x54] ss:$8 sps:$4 sm:$0xff]   ;;  %v533_v14 = vld [vmem:[#allocation7 + $0x48] sm:$0xff]   ;;  %s657_s30 = smov [#allocation8]  }
  0x3c   :  { %v532_v12 = vld [vmem:[#allocation7] sm:$0xff]   ;;  %475 = vmatprep.subr.bf16.mxu1 %v531_v10  ;;  %v534_v15 = vld [vmem:[#allocation7 + $0x8] sm:$0xff]   ;;  %v523_v16 = vld [vmem:[#allocation5 + $0x50] ss:$8 sps:$4 sm:$0xff]   ;;  %s428_s5 = sshll.u32 %s657_s30, 4  ;;  %s429_s5 = int_to_ptr.vmem [resolvable:$true] %s428_s5 }
  0x3d   :  { %167 = vmatpush1.bf16.msra.mxu0 %v511_v4  ;;  %476 = vmatpush3.bf16.msra.mxu1 %v532_v12  ;;  %v524_v17 = vld [vmem:[#allocation5 + $0x64] ss:$8 sps:$4 sm:$0xff]   ;;  %v526_v18 = vld [vmem:[#allocation5 + $0x60] ss:$8 sps:$4 sm:$0xff]   ;;  %v527_v19 = vld [vmem:[#allocation5 + $0x74] ss:$8 sps:$4 sm:$0xff]   ;;  %p626_p11 = scmp.lt.s32.totalorder %s429_s5, %s429_s5 }
  0x3e   :  { %168 = vmatprep.subr.bf16.mxu0 %v512_v5  ;;  %477 = vmatprep.subr.bf16.mxu1 %v533_v14  ;;  %v529_v20 = vld [vmem:[#allocation5 + $0x70] ss:$8 sps:$4 sm:$0xff]   ;;  %v539_v26 = vld [vmem:[#allocation7 + $0x60] sm:$0xff]   ;;  %v541_v28 = vld [vmem:[#allocation7 + $0x68] sm:$0xff]   ;;  %s621_s6 = scalar_lea.vmem %s429_s5, 256 }
  0x3f   :  { %v535_v22 = vld [vmem:[#allocation7 + $0x50] sm:$0xff]   ;;  %v537_v24 = vld [vmem:[#allocation7 + $0x58] sm:$0xff]   ;;  %v540_v27 = vld [vmem:[#allocation7 + $0x20] sm:$0xff]   ;;  %p622_p10 = scmp.ne.s32.totalorder %s429_s5, %s621_s6  ;;  %p627_p12 = scmp.lt.s32.totalorder %s621_s6, %s621_s6 }
  0x40   :  { %v536_v23 = vld [vmem:[#allocation7 + $0x10] sm:$0xff]   ;;  %v538_v25 = vld [vmem:[#allocation7 + $0x18] sm:$0xff]   ;;  %v542_v29 = vld [vmem:[#allocation7 + $0x28] sm:$0xff]  }
  0x41   :  { %169 = vmatpush1.bf16.msra.mxu0 %v514_v6  ;;  %478 = vmatpush3.bf16.msra.mxu1 %v534_v15  ;;  %v543_v30 = vld [vmem:[#allocation7 + $0x70] sm:$0xff]   ;;  %v545_v32 = vld [vmem:[#allocation7 + $0x78] sm:$0xff]   ;;  %p628_p13 = por %p627_p12, %p626_p11 }
  0x42   :  { %170 = vmatprep.subr.bf16.mxu0 %v515_v7  ;;  %479 = vmatprep.subr.bf16.mxu1 %v535_v22  ;;  %v544_v31 = vld [vmem:[#allocation7 + $0x30] sm:$0xff]   ;;  %v546_v33 = vld [vmem:[#allocation7 + $0x38] sm:$0xff]  }
  0x43   :  { %v458_v5 = vld [vmem:[%s745_s3] ss:$0 sm:$0xff]  ;;  %p629_p0 = pnand %p628_p13, %p622_p10 }
  0x45   :  { %171 = vmatpush1.bf16.msra.mxu0 %v517_v8  ;;  %480 = vmatpush3.bf16.msra.mxu1 %v536_v23 }
  0x46   :  { %172 = vmatprep.subr.bf16.mxu0 %v518_v9  ;;  %481 = vmatprep.subr.bf16.mxu1 %v537_v24 }
  0x49   :  { %173 = vmatpush1.bf16.msra.mxu0 %v520_v11  ;;  %482 = vmatpush3.bf16.msra.mxu1 %v538_v25 }
  0x4a   :  { %174 = vmatprep.subr.bf16.mxu0 %v521_v13  ;;  %483 = vmatprep.subr.bf16.mxu1 %v539_v26 }
  0x4d   :  { %175 = vmatpush1.bf16.msra.mxu0 %v523_v16  ;;  %484 = vmatpush3.bf16.msra.mxu1 %v540_v27 }
  0x4e   :  { %176 = vmatprep.subr.bf16.mxu0 %v524_v17  ;;  %485 = vmatprep.subr.bf16.mxu1 %v541_v28 }
  0x51   :  { %177 = vmatpush1.bf16.msra.mxu0 %v526_v18  ;;  %486 = vmatpush3.bf16.msra.mxu1 %v542_v29 }
  0x52   :  { %178 = vmatprep.subr.bf16.mxu0 %v527_v19  ;;  %487 = vmatprep.subr.bf16.mxu1 %v543_v30 }
  0x55   :  { %179 = vmatpush1.bf16.msra.mxu0 %v529_v20  ;;  %488 = vmatpush3.bf16.msra.mxu1 %v544_v31 }
  0x56   :  { %489 = vmatprep.subr.bf16.mxu1 %v545_v32 }
  0x58   :  { %197 = vmatmul.mubr.bf16.vlgmr.msra.gmra.mrb[0].mxu0 %v530_v21 }
  0x59   :  { %490 = vmatpush3.bf16.msra.mxu1 %v546_v33 }
 0x12b   :  { %v198_v34 = vpop.f32.mrb[0].mxu0 }
 0x12c   :  { %v207_v35 = vmul.f32 %v198_v34, %v198_v34  ;;  %v200_v36 = vpop.f32.mrb[1].mxu0 }
 0x12d   :  { %v208_v37 = vmul.f32 %v200_v36, %v200_v36  ;;  %v202_v38 = vpop.f32.mrb[2].mxu0 }
 0x12e   :  { %v211_v39 = vadd.f32 1e-20, %v207_v35  ;;  %v209_v40 = vmul.f32 %v202_v38, %v202_v38  ;;  %v204_v41 = vpop.f32.mrb[3].mxu0 }
 0x12f   :  { %v212_v42 = vadd.f32 1e-20, %v208_v37  ;;  %v210_v43 = vmul.f32 %v204_v41, %v204_v41 }
 0x130   :  { %547 = vrsqrt.f32 %v211_v39  ;;  %v213_v44 = vadd.f32 1e-20, %v209_v40  ;;  %vm217_vm0 = vcmp.eq.f32.partialorder %v211_v39, inf  ;;  %vm219_vm3 = vcmp.eq.f32.partialorder %v211_v39, 0.0 }
 0x131   :  { %v214_v45 = vadd.f32 1e-20, %v210_v43  ;;  %549 = vrsqrt.f32 %v212_v42  ;;  %vm224_vm1 = vcmp.eq.f32.partialorder %v212_v42, inf  ;;  %vm226_vm2 = vcmp.eq.f32.partialorder %v212_v42, 0.0 }
 0x132   :  { %551 = vrsqrt.f32 %v213_v44  ;;  %v227_v52 = vand.u32 2147483648, %v212_v42  ;;  %v220_v54 = vand.u32 2147483648, %v211_v39  ;;  %vm231_vm4 = vcmp.eq.f32.partialorder %v213_v44, inf }
 0x133   :  { %553 = vrsqrt.f32 %v214_v45  ;;  %v234_v58 = vand.u32 2147483648, %v213_v44  ;;  %vm238_vm5 = vcmp.eq.f32.partialorder %v214_v45, inf  ;;  %v241_v59 = vand.u32 2147483648, %v214_v45 }
 0x134   :  { %vm233_vm6 = vcmp.eq.f32.partialorder %v213_v44, 0.0  ;;  %vm240_vm7 = vcmp.eq.f32.partialorder %v214_v45, 0.0 }
 0x13a   :  { %v548_v46 = vpop.eup %547 }
 0x13b   :  { %v550_v47 = vpop.eup %549  ;;  %v216_v48 = vmul.f32 %v548_v46, %v211_v39 }
 0x13c   :  { %v552_v49 = vpop.eup %551  ;;  %v223_v50 = vmul.f32 %v550_v47, %v212_v42 }
 0x13d   :  { %v554_v51 = vpop.eup %553  ;;  %v218_v53 = vsel %vm217_vm0, %v211_v39, %v216_v48  ;;  %v230_v55 = vmul.f32 %v552_v49, %v213_v44 }
 0x13e   :  { %v225_v56 = vsel %vm224_vm1, %v212_v42, %v223_v50  ;;  %v237_v57 = vmul.f32 %v554_v51, %v214_v45  ;;  %v221_v62 = vsel %vm219_vm3, %v220_v54, %v218_v53 }
 0x13f   :  { %v232_v60 = vsel %vm231_vm4, %v213_v44, %v230_v55  ;;  %v228_v0 = vsel %vm226_vm2, %v227_v52, %v225_v56 }
 0x140   :  { %v239_v61 = vsel %vm238_vm5, %v214_v45, %v237_v57  ;;  %v235_v63 = vsel %vm233_vm6, %v234_v58, %v232_v60 }
 0x141   :  { %v242_v1 = vsel %vm240_vm7, %v241_v59, %v239_v61  ;;  %v243_v2 = vpack.c.bf16 %v235_v63, %v221_v62 }
 0x142   :  { %v244_v3 = vpack.c.bf16 %v242_v1, %v228_v0 }
 0x144   :  { %412 = vmatprep.mubr.bf16.mxu1 %v244_v3 }
 0x145   :  { %413 = vmatmul.mubr.bf16.vlgmr.msra.gmra.mrb[0].mxu1 %v243_v2 }
 0x218   :  { %v491_v4 = vpop.f32.mrb[0].mxu1 }
 0x219   :  { %v492_v6 = vpop.f32.mrb[1].mxu1 }
 0x21a   :  { %v493_v7 = vadd.f32 %v492_v6, %v491_v4  ;;  %v494_v8 = vpop.f32.mrb[2].mxu1 }
 0x21b   :  { %v495_v9 = vpop.f32.mrb[3].mxu1 }
 0x21c   :  { %v415_v10 = vadd.f32 %v493_v7, %v458_v5  ;;  %v496_v11 = vadd.f32 %v495_v9, %v494_v8 }
 0x21e   :  { %421 = vst [vmem:[#allocation8] sm:$0xff] %v415_v10  ;;  %v418_v12 = vadd.f32 %v496_v11, %v458_v5 }
 0x220   :  { %422 = vst [vmem:[#allocation8 + $0x8] sm:$0xff] %v418_v12 }
 0x221   :  { %632 = shalt.err (!%p629_p0)
}
 0x222   :  { %s633_s8 = scalar_lea.hbm %s746_s4, 256 }
 0x223   :  { %p634_p1 = scmp.ne.s32.totalorder %s746_s4, %s633_s8  ;;  %p637_p2 = scmp.lt.u32.totalorder %s633_s8, %s746_s4 }
 0x225   :  { %p639_p3 = pnand %p637_p2, %p634_p1 }
 0x227   :  { %642 = shalt.err (!%p639_p3)
}
 0x228   :  { %434 = dma.vmem_to_hbm [thread:$0]  %s429_s5, 256, %s746_s4, [#allocation4], %s650_s25, %s650_s25, %s651_s26  }
 0x229   :  { %647 = dma.done.wait [#allocation4], 256  }
 0x22a   :  { %648 = vsyncadd [#allocation4], 4294967040 }
 0x22b   :  { %438 = vsyncpa [#allocation3], 1 }
 0x22c   :  { %439 = vsyncpa [#allocation6], 1 }
 0x22d   :  { %440 = vsyncpa [#allocation4], 1 }

</bundles_post_ra>
